<compile_context>
chip_gen: v6e
topology: v6e:2x2x1
jax: 0.10.0
libtpu: 0.0.40
codegen_flags: <defaults>
</compile_context>

<pallas_src>
import jax
import jax.numpy as jnp
from jax.experimental import pallas as pl
from jax.experimental.pallas import tpu as pltpu

ALPHA_UNSUP = 1000.0
ALPHA_TV = 1e-05

_TV_TILE_ELEMS = 512 * 1024      # ~2 MiB f32-equivalent per TV h-tile


def _tpu_budgets():
    """Returns (l1_tile_elems_per_input, vmem_limit_bytes) per TPU generation."""
    try:
        vmem_cap = getattr(pltpu.get_tpu_info(), "vmem_capacity_bytes", 0) or 0
    except Exception:
        vmem_cap = 0
    if vmem_cap >= 100 * 1024 * 1024:
        # 128 MiB parts (v5e / v6e): ~8 MiB f32 tiles, raised scoped-VMEM limit
        # (v5e's default scoped limit is only 16 MiB, so the override matters).
        return 2_097_152, 96 * 1024 * 1024
    # 64 MiB parts (v7x) or undetected hardware: ~6 MiB f32 tiles, 48 MiB limit.
    return 1_572_864, 48 * 1024 * 1024


def _fold_sublanes(x, pr):
    """(R, C) -> (pr, C) partial sums by folding 8-row sublane groups.

    The reshape groups whole vreg row-blocks, so it is layout-preserving and
    the reduction lowers to pure VPU adds (no cross-lane XLU work)."""
    r, c = x.shape
    if r == pr:
        return x
    return jnp.sum(x.reshape(r // pr, pr, c), axis=0)


def _l1_partial_sums(gemo, oof):
    """Streams |gemo - oof|; returns per-tile lane-dense partial-sum blocks."""
    assert gemo.shape == oof.shape, "SingleDP_gemo / SingleDPOoF must match"
    total = gemo.size
    itemsize = jnp.dtype(gemo.dtype).itemsize
    tile_elems, vmem_limit = _tpu_budgets()

    # Lane-dense flat view (rows, 128) whenever the element count allows it
    # (free metadata reshape of a contiguous array).  Rare fallback keeps the
    # native last dim as the lane width.
    cols = 128 if total % 128 == 0 else gemo.shape[-1]
    rows = total // cols
    a = gemo.reshape(rows, cols)
    b = oof.reshape(rows, cols)

    # Row-tile: large multiple of 512 rows (native-tile aligned for any dtype),
    # sized so one input tile holds ~tile_elems elements.
    tr = max(512, (tile_elems // cols) // 512 * 512)
    if rows <= tr:
        tr, n_blocks = rows, 1
    else:
        n_blocks = pl.cdiv(rows, tr)
    needs_mask = (tr * n_blocks != rows)              # ragged last row-tile
    pr = 8 if (tr % 8 == 0 and tr >= 8) else tr       # partial-sum sublane rows

    def kernel(g_ref, o_ref, out_ref):
        # Tiles arrive in native dtype; cast in-vreg (plenty of VPU slack).
        d = jnp.abs(g_ref[...].astype(jnp.float32) - o_ref[...].astype(jnp.float32))
        if needs_mask:
            is_last = pl.program_id(0) == n_blocks - 1

            @pl.when(is_last)
            def _():
                # Select-mask (not multiply) the out-of-range rows of the last
                # ragged tile only; (tr, 1) iota broadcasts over the lanes.
                row = jax.lax.broadcasted_iota(jnp.int32, (tr, 1), 0)
                dm = jnp.where(pl.program_id(0) * tr + row < rows, d, 0.0)
                out_ref[...] = _fold_sublanes(dm, pr)

            @pl.when(jnp.logical_not(is_last))
            def _():
                out_ref[...] = _fold_sublanes(d, pr)
        else:
            out_ref[...] = _fold_sublanes(d, pr)

    cost = pl.CostEstimate(
        flops=3 * total,
        transcendentals=0,
        bytes_accessed=2 * total * itemsize + n_blocks * pr * cols * 4,
    )

    return pl.pallas_call(
        kernel,
        out_shape=jax.ShapeDtypeStruct((n_blocks, pr, cols), jnp.float32),
        grid=(n_blocks,),
        in_specs=[
            pl.BlockSpec((tr, cols), lambda i: (i, 0)),
            pl.BlockSpec((tr, cols), lambda i: (i, 0)),
        ],
        out_specs=pl.BlockSpec((None, pr, cols), lambda i: (i, 0, 0)),
        compiler_params=pltpu.CompilerParams(
            dimension_semantics=("parallel",),
            vmem_limit_bytes=vmem_limit,
        ),
        cost_estimate=cost,
    )(a, b)


def _tv_partial_sums(blur):
    """Per-channel partial sums of anisotropic TV over an NCHW blur map."""
    n, c, h, w = blur.shape
    nc = n * c
    itemsize = jnp.dtype(blur.dtype).itemsize
    _, vmem_limit = _tpu_budgets()

    x3 = blur.reshape(nc, h, w)                        # free metadata reshape

    # H-tile sized to a bounded VMEM footprint (multiple of 8 rows).
    th = max(8, (_TV_TILE_ELEMS // max(1, w)) // 8 * 8)
    if h <= th:
        th, n_h = h, 1
    else:
        n_h = pl.cdiv(h, th)
    pr = 8 if (th % 8 == 0 and th >= 8) else th

    def kernel(x_ref, out_ref, prev_ref):
        hb = pl.program_id(1)

        @pl.when(hb == 0)
        def _():
            out_ref[...] = jnp.zeros_like(out_ref)

        x = x_ref[...].astype(jnp.float32)             # (th, w)
        grow = hb * th + jax.lax.broadcasted_iota(jnp.int32, (th, 1), 0)

        # Vertical neighbour diffs: row i vs row i-1; row 0 of the tile uses
        # the previous tile's last row carried in the VMEM scratch across the
        # serial h-grid axis.  Select-masking (not multiply) kills both the
        # global first row and any ragged-tail garbage rows.
        prev_row = prev_ref[...]                       # (1, w)
        if th > 1:
            x_above = jnp.concatenate([prev_row, x[: th - 1, :]], axis=0)
        else:
            x_above = prev_row
        vmask = jnp.logical_and(grow >= 1, grow < h)   # (th, 1), broadcasts
        vfield = jnp.where(vmask, jnp.abs(x - x_above), 0.0)
        out_ref[...] += _fold_sublanes(vfield, pr)

        # Horizontal neighbour diffs (columns 0..w-2).
        if w > 1:
            hfield = jnp.abs(x[:, 1:] - x[:, : w - 1])           # (th, w-1)
            hfield = jnp.where(grow < h, hfield, 0.0)
            out_ref[:, : w - 1] += _fold_sublanes(hfield, pr)

        # Carry this tile's last row for the next h-block of the same channel
        # (never read at hb == 0, so stale values across channels are harmless).
        prev_ref[...] = x[th - 1 :, :]

    cost = pl.CostEstimate(
        flops=4 * blur.size,
        transcendentals=0,
        bytes_accessed=blur.size * itemsize + nc * pr * w * 4,
    )

    return pl.pallas_call(
        kernel,
        out_shape=jax.ShapeDtypeStruct((nc, pr, w), jnp.float32),
        grid=(nc, n_h),
        in_specs=[pl.BlockSpec((None, th, w), lambda i, hb: (i, hb, 0))],
        out_specs=pl.BlockSpec((None, pr, w), lambda i, hb: (i, 0, 0)),
        scratch_shapes=[pltpu.VMEM((1, w), jnp.float32)],
        compiler_params=pltpu.CompilerParams(
            dimension_semantics=("parallel", "arbitrary"),
            vmem_limit_bytes=vmem_limit,
        ),
        cost_estimate=cost,
    )(x3)


def gemo_loss(blur_map, single_dp_gemo, single_dp_oof, epoch=0):
    """blur_map, single_dp_gemo, single_dp_oof: NCHW arrays (native dtype)."""
    l1_sum = jnp.sum(_l1_partial_sums(single_dp_gemo, single_dp_oof),
                     dtype=jnp.float32)
    tv_sum = jnp.sum(_tv_partial_sums(blur_map), dtype=jnp.float32)

    unsurpervise_loss = (l1_sum / float(single_dp_gemo.size)) * ALPHA_UNSUP
    tv_loss = tv_sum * ALPHA_TV

    losses = {
        "unsurpervise loss": unsurpervise_loss,
        "tv loss": tv_loss,
    }
    # `epoch` must stay a static Python int (the PyTorch module branches on a
    # host-side counter); use lax.cond only if it ever becomes a traced value.
    # TODO(synk): the module's `self.epoch += 1` host-side counter has no
    # in-kernel equivalent; the caller owns the epoch value.
    if epoch < 3000:
        losses["total_loss"] = unsurpervise_loss
    else:
        losses["total_loss"] = unsurpervise_loss + tv_loss
    return losses


if __name__ == "__main__":
    key = jax.random.PRNGKey(0)
    k1, k2, k3 = jax.random.split(key, 3)

    # Small NCHW shapes consistent with the forward pass.
    blur_map = jax.random.uniform(k1, (2, 1, 16, 16), dtype=jnp.float32)
    single_dp_gemo = jax.random.normal(k2, (2, 4, 16, 16), dtype=jnp.float32)
    single_dp_oof = jax.random.normal(k3, (2, 4, 16, 16), dtype=jnp.float32)

    losses = gemo_loss(blur_map, single_dp_gemo, single_dp_oof, epoch=0)
    jax.block_until_ready(losses["total_loss"])
    jax.block_until_ready(losses["tv loss"])
    jax.block_until_ready(losses["unsurpervise loss"])

    # Sanity check against a pure-JAX reference.
    ref_unsup = jnp.mean(jnp.abs(single_dp_gemo - single_dp_oof)) * ALPHA_UNSUP
    ref_tv = (
        jnp.sum(jnp.abs(blur_map[:, :, 1:, :] - blur_map[:, :, :-1, :]))
        + jnp.sum(jnp.abs(blur_map[:, :, :, 1:] - blur_map[:, :, :, :-1]))
    ) * ALPHA_TV
    assert jnp.allclose(losses["unsurpervise loss"], ref_unsup, rtol=1e-5, atol=1e-5)
    assert jnp.allclose(losses["tv loss"], ref_tv, rtol=1e-5, atol=1e-5)
    assert jnp.allclose(losses["total_loss"], ref_unsup, rtol=1e-5, atol=1e-5)

    print("KERNEL_OK")
</pallas_src>

<mosaic_0001>
module attributes {stable_mosaic.version = 11 : i64} {
  func.func @kernel(%arg0: i32, %arg1: memref<16x128xf32, #tpu.memory_space<vmem>>, %arg2: memref<16x128xf32, #tpu.memory_space<vmem>>, %arg3: memref<1x8x128xf32, #tpu.memory_space<vmem>>) attributes {dimension_semantics = [#tpu.dimension_semantics<parallel>], iteration_bounds = array<i64: 1>, scalar_prefetch = 0 : i64, scratch_operands = 0 : i64, tpu.core_type = #tpu.core_type<tc>, window_params = [{transform_indices = @transform_0, window_bounds = array<i64: 16, 128>}, {transform_indices = @transform_1, window_bounds = array<i64: 16, 128>}, {transform_indices = @transform_2, window_bounds = array<i64: 1, 8, 128>}]} {
    %c0 = arith.constant 0 : index
    %c0_0 = arith.constant 0 : index
    %0 = vector.load %arg1[%c0, %c0_0] : memref<16x128xf32, #tpu.memory_space<vmem>>, vector<16x128xf32>
    %c0_1 = arith.constant 0 : index
    %c0_2 = arith.constant 0 : index
    %1 = vector.load %arg2[%c0_1, %c0_2] : memref<16x128xf32, #tpu.memory_space<vmem>>, vector<16x128xf32>
    %2 = arith.subf %0, %1 : vector<16x128xf32>
    %3 = math.absf %2 : vector<16x128xf32>
    %4 = vector.shape_cast %3 : vector<16x128xf32> to vector<2x8x128xf32>
    %cst = arith.constant dense<0.000000e+00> : vector<8x128xf32>
    %5 = vector.multi_reduction <add>, %4, %cst [0] : vector<2x8x128xf32> to vector<8x128xf32>
    %c0_3 = arith.constant 0 : index
    %c0_4 = arith.constant 0 : index
    %c0_5 = arith.constant 0 : index
    %6 = vector.load %arg3[%c0_3, %c0_4, %c0_5] : memref<1x8x128xf32, #tpu.memory_space<vmem>>, vector<1x8x128xf32>
    %7 = vector.shape_cast %6 : vector<1x8x128xf32> to vector<8x128xf32>
    %8 = vector.shape_cast %5 : vector<8x128xf32> to vector<1x8x128xf32>
    tpu.vector_store %arg3[%c0_3, %c0_4, %c0_5], %8 {strides = array<i32>} : memref<1x8x128xf32, #tpu.memory_space<vmem>>, vector<1x8x128xf32>,
    return
  }
  func.func @transform_0(%arg0: i32) -> (i32, i32) {
    %c0_i32 = arith.constant 0 : i32
    %c0_i32_0 = arith.constant 0 : i32
    return %arg0, %c0_i32 : i32, i32
  }
  func.func @transform_1(%arg0: i32) -> (i32, i32) {
    %c0_i32 = arith.constant 0 : i32
    %c0_i32_0 = arith.constant 0 : i32
    return %arg0, %c0_i32 : i32, i32
  }
  func.func @transform_2(%arg0: i32) -> (i32, i32, i32) {
    %c0_i32 = arith.constant 0 : i32
    %c0_i32_0 = arith.constant 0 : i32
    %c0_i32_1 = arith.constant 0 : i32
    return %arg0, %c0_i32, %c0_i32_0 : i32, i32, i32
  }
}

</mosaic_0001>

<bundles_post_ra>
// kernel: tpu_custom_call.1
= control target key start
LH: loop header
LB: loop body
LE: loop exit
PB: predicated region body
PF: predicated region fallthrough
CT: control target
= control target key end

     0   :  { %7 = vsyncpa [#allocation3], 0  ;;  %s166_s0 = inlined_call_operand.hbm [shape: f32[16,128], index: 0, kind: input, shape index: {}]   ;;  %s167_s1 = inlined_call_operand.hbm [shape: f32[16,128], index: 1, kind: input, shape index: {}]   ;;  %s168_s2 = inlined_call_operand.hbm [shape: f32[1,8,128], index: 2, kind: output, shape index: {}]  }
   0x1   :  { %8 = vsyncpa [#allocation6], 0 }
   0x2   :  { %9 = vsyncpa [#allocation4], 0  ;;  %s137_s9 = smov [#allocation2]  }
   0x3   :  { %s15_s10 = sshll.u32 %s137_s9, 4  ;;  %s16_s10 = int_to_ptr.vmem [resolvable:$true] %s15_s10 }
   0x4   :  { %s79_s11 = scalar_lea.vmem %s16_s10, 256  ;;  %p84_p1 = scmp.lt.s32.totalorder %s16_s10, %s16_s10 }
   0x5   :  { %p80_p0 = scmp.ne.s32.totalorder %s16_s10, %s79_s11  ;;  %p85_p2 = scmp.lt.s32.totalorder %s79_s11, %s79_s11 }
   0x7   :  { %p86_p3 = por %p85_p2, %p84_p1 }
   0x9   :  { %p87_p4 = pnand %p86_p3, %p80_p0 }
   0xb   :  { %90 = shalt.err (!%p87_p4)
}
   0xc   :  { %s138_s12 = smov 128   ;;  %s139_s13 = smov 8  }
   0xd   :  { %21 = dma.hbm_to_vmem [thread:$0]  %s166_s0, 256, %s16_s10, [#allocation3], %s138_s12, %s138_s12, %s139_s13  }
   0xe   :  { %s140_s16 = smov [#allocation5]  }
   0xf   :  { %s27_s17 = sshll.u32 %s140_s16, 4  ;;  %s28_s17 = int_to_ptr.vmem [resolvable:$true] %s27_s17 }
  0x10   :  { %s99_s18 = scalar_lea.vmem %s28_s17, 256  ;;  %p104_p6 = scmp.lt.s32.totalorder %s28_s17, %s28_s17 }
  0x11   :  { %p100_p5 = scmp.ne.s32.totalorder %s28_s17, %s99_s18  ;;  %p105_p7 = scmp.lt.s32.totalorder %s99_s18, %s99_s18 }
  0x13   :  { %p106_p8 = por %p105_p7, %p104_p6 }
  0x15   :  { %p107_p9 = pnand %p106_p8, %p100_p5 }
  0x17   :  { %110 = shalt.err (!%p107_p9)
}
  0x18   :  { %33 = dma.hbm_to_vmem [thread:$0]  %s167_s1, 256, %s28_s17, [#allocation6], %s138_s12, %s138_s12, %s139_s13  }
  0x19   :  { %131 = dma.done.wait [#allocation3], 256  }
  0x1a   :  { %132 = vsyncadd [#allocation3], 4294967040 }
  0x1b   :  { %133 = dma.done.wait [#allocation6], 256  }
  0x1c   :  { %134 = vsyncadd [#allocation6], 4294967040  ;;  %v40_v0 = vld [vmem:[#allocation2] sm:$0xff]  ;;  %v41_v1 = vld [vmem:[#allocation2 + $0x8] sm:$0xff]  ;;  %s141_s0 = smov [#allocation7]  }
  0x1d   :  { %v42_v2 = vld [vmem:[#allocation5] sm:$0xff]  ;;  %v43_v3 = vld [vmem:[#allocation5 + $0x8] sm:$0xff]  ;;  %s56_s21 = sshll.u32 %s141_s0, 4  ;;  %s57_s21 = int_to_ptr.vmem [resolvable:$true] %s56_s21 }
  0x1e   :  { %v44_v4 = vsub.f32 %v40_v0, %v42_v2  ;;  %v45_v5 = vsub.f32 %v41_v1, %v43_v3  ;;  %s111_s22 = scalar_lea.vmem %s57_s21, 128  ;;  %p116_p11 = scmp.lt.s32.totalorder %s57_s21, %s57_s21 }
  0x1f   :  { %p112_p10 = scmp.ne.s32.totalorder %s57_s21, %s111_s22  ;;  %p117_p12 = scmp.lt.s32.totalorder %s111_s22, %s111_s22 }
  0x20   :  { %v46_v6 = vand.u32 2147483647, %v44_v4  ;;  %v47_v7 = vand.u32 2147483647, %v45_v5 }
  0x21   :  { %p118_p13 = por %p117_p12, %p116_p11 }
  0x22   :  { %v48_v8 = vadd.f32 %v47_v7, %v46_v6 }
  0x23   :  { %p119_p0 = pnand %p118_p13, %p112_p10 }
  0x24   :  { %49 = vst [vmem:[#allocation7] sm:$0xff] %v48_v8 }
  0x25   :  { %122 = shalt.err (!%p119_p0)
}
  0x26   :  { %59 = dma.vmem_to_hbm [thread:$0]  %s57_s21, 128, %s168_s2, [#allocation4]  }
  0x27   :  { %135 = dma.done.wait [#allocation4], 128  }
  0x28   :  { %136 = vsyncadd [#allocation4], 4294967168 }
  0x29   :  { %63 = vsyncpa [#allocation3], 1 }
  0x2a   :  { %64 = vsyncpa [#allocation6], 1 }
  0x2b   :  { %65 = vsyncpa [#allocation4], 1 }

</bundles_post_ra>
